<compile_context>
chip_gen: v7x
topology: tpu7x:2x2x1
jax: 0.10.0
libtpu: 0.0.40
codegen_flags: <defaults>
</compile_context>

<pallas_src>
import functools

import jax
import jax.numpy as jnp
from jax.experimental import pallas as pl
from jax.experimental.pallas import tpu as pltpu


def _fused_mlp_kernel(*refs, num_hidden: int, relu_flags: tuple):
    """Fused CriticV forward: hidden Linear(+ReLU) chain, then scalar head.

    refs = (x_ref, w0, b0, w1, b1, ..., w_out_row, b_out, o_ref)
      x_ref:      (TB, in_dim)           f32
      w_i:        (d_i, d_{i+1})         f32   (resident in VMEM)
      b_i:        (1, d_{i+1})           f32
      w_out_row:  (1, d_last)            f32   (output head weight, as a row)
      b_out:      (1, 1)                 f32
      o_ref:      (TB, 1)                f32
    """
    x_ref = refs[0]
    o_ref = refs[-1]
    prefs = refs[1:-1]

    x = x_ref[...].astype(jnp.float32)
    for li in range(num_hidden):
        w = prefs[2 * li][...]
        b = prefs[2 * li + 1][...]
        x = jnp.dot(x, w, preferred_element_type=jnp.float32) + b
        if relu_flags[li]:
            x = jnp.maximum(x, 0.0)

    # Value head (out_dim == 1): VPU multiply + XLU row-reduce instead of a
    # 1-column MXU matmul (avoids lane-sparse MXU use).
    w_row = prefs[-2][...]            # (1, d_last)
    b_out = prefs[-1][...]            # (1, 1)
    value = jnp.sum(x * w_row, axis=-1, keepdims=True) + b_out
    o_ref[...] = value.astype(o_ref.dtype)


def init_critic_v_params(key, in_dim: int, layers_data, init_w: float = 0.003):
    """Deterministic parameter init mirroring CriticV.__init__.

    Hidden layers: PyTorch nn.Linear default init, uniform(-1/sqrt(fan_in), ..).
    Output layer:  init_layer_uniform -> uniform(-init_w, init_w).
    Weights stored as (in_features, out_features); biases as (1, out_features).
    """
    params = []
    d = in_dim
    for size, _activation in layers_data:
        key, kw, kb = jax.random.split(key, 3)
        bound = 1.0 / jnp.sqrt(float(d))
        w = jax.random.uniform(kw, (d, size), jnp.float32, -bound, bound)
        b = jax.random.uniform(kb, (1, size), jnp.float32, -bound, bound)
        params.append((w, b))
        d = size
    key, kw, kb = jax.random.split(key, 3)
    w_out = jax.random.uniform(kw, (d, 1), jnp.float32, -init_w, init_w)
    b_out = jax.random.uniform(kb, (1, 1), jnp.float32, -init_w, init_w)
    params.append((w_out, b_out))
    return params


def critic_v_forward(state, params, activations, *, batch_tile: int = 512):
    """Forward pass of CriticV as one fused Pallas kernel.

    state:       (batch, in_dim) f32
    params:      list of (W, b); last entry is the output head ((d_last,1),(1,1))
    activations: list of bool (apply ReLU?) for each hidden layer
    returns:     (batch, 1) f32 state value
    """
    state = jnp.asarray(state, jnp.float32)
    batch, in_dim = state.shape

    hidden_params = params[:-1]
    w_out, b_out = params[-1]
    w_out_row = jnp.transpose(w_out)          # (1, d_last) — row layout for VPU head

    flat_params = []
    for (w, b) in hidden_params:
        flat_params.extend((w, b))
    flat_params.extend((w_out_row, b_out))

    num_hidden = len(hidden_params)
    relu_flags = tuple(bool(a) for a in activations)
    kernel = functools.partial(
        _fused_mlp_kernel, num_hidden=num_hidden, relu_flags=relu_flags
    )

    # Cost hint for XLA scheduling.
    flops = 0
    for (w, _b) in params:
        flops += 2 * batch * int(w.shape[0]) * int(w.shape[1])
    param_bytes = sum(int(w.size) + int(b.size) for (w, b) in params)
    bytes_accessed = 4 * (batch * in_dim + param_bytes + batch)
    cost = pl.CostEstimate(
        flops=int(flops), transcendentals=0, bytes_accessed=int(bytes_accessed)
    )

    if batch <= batch_tile:
        # Small batch: single block, everything resident in VMEM, no grid loop.
        return pl.pallas_call(
            kernel,
            out_shape=jax.ShapeDtypeStruct((batch, 1), jnp.float32),
            cost_estimate=cost,
        )(state, *flat_params)

    # Large batch: tile only the batch axis; weights/biases pinned in VMEM via
    # constant index_maps; batch axis is "parallel" (megacore-shardable).
    tb = batch_tile  # multiple of 8
    padded = pl.cdiv(batch, tb) * tb
    x = state if padded == batch else jnp.pad(state, ((0, padded - batch), (0, 0)))

    in_specs = [pl.BlockSpec((tb, in_dim), lambda i: (i, 0))]
    for p in flat_params:
        in_specs.append(pl.BlockSpec(p.shape, lambda i: (0, 0)))
    out_spec = pl.BlockSpec((tb, 1), lambda i: (i, 0))

    out = pl.pallas_call(
        kernel,
        out_shape=jax.ShapeDtypeStruct((padded, 1), jnp.float32),
        grid=(padded // tb,),
        in_specs=in_specs,
        out_specs=out_spec,
        compiler_params=pltpu.CompilerParams(dimension_semantics=("parallel",)),
        cost_estimate=cost,
    )(x, *flat_params)
    return out[:batch]


def _reference_forward(state, params, activations):
    x = state
    for (w, b), act in zip(params[:-1], activations):
        x = x @ w + b
        if act:
            x = jnp.maximum(x, 0.0)
    w_out, b_out = params[-1]
    return x @ w_out + b_out


if __name__ == "__main__":
    # Module-consistent small shapes: state dim 16, two hidden layers of 32
    # with ReLU activations, scalar value head.
    batch = 4
    in_dim = 16
    layers_data = [(32, "relu"), (32, "relu")]  # (size, activation) tuples
    activations = [a is not None for _, a in layers_data]

    key = jax.random.PRNGKey(0)
    key, k_state, k_params = jax.random.split(key, 3)

    state = jax.random.normal(k_state, (batch, in_dim), jnp.float32)
    params = init_critic_v_params(k_params, in_dim, layers_data)

    # Small-batch (grid-less fused) path.
    value = critic_v_forward(state, params, activations)
    value = jax.block_until_ready(value)
    ref = _reference_forward(state, params, activations)
    assert value.shape == (batch, 1), value.shape
    assert jnp.allclose(value, ref, atol=1e-5, rtol=1e-5)

    # Exercise the batch-tiled ("parallel" grid) path with a ragged batch.
    key, k_big = jax.random.split(key)
    big_batch = 20
    big_state = jax.random.normal(k_big, (big_batch, in_dim), jnp.float32)
    big_value = critic_v_forward(big_state, params, activations, batch_tile=8)
    big_value = jax.block_until_ready(big_value)
    big_ref = _reference_forward(big_state, params, activations)
    assert big_value.shape == (big_batch, 1), big_value.shape
    assert jnp.allclose(big_value, big_ref, atol=1e-5, rtol=1e-5)

    print("KERNEL_OK")
</pallas_src>

<mosaic_0001>
module attributes {stable_mosaic.version = 11 : i64} {
  func.func @_fused_mlp_kernel(%arg0: memref<4x16xf32, #tpu.memory_space<vmem>>, %arg1: memref<16x32xf32, #tpu.memory_space<vmem>>, %arg2: memref<1x32xf32, #tpu.memory_space<vmem>>, %arg3: memref<32x32xf32, #tpu.memory_space<vmem>>, %arg4: memref<1x32xf32, #tpu.memory_space<vmem>>, %arg5: memref<1x32xf32, #tpu.memory_space<vmem>>, %arg6: memref<1x1xf32, #tpu.memory_space<vmem>>, %arg7: memref<4x1xf32, #tpu.memory_space<vmem>>) attributes {dimension_semantics = [], scalar_prefetch = 0 : i64, scratch_operands = 0 : i64, tpu.core_type = #tpu.core_type<tc>} {
    %c0 = arith.constant 0 : index
    %c0_0 = arith.constant 0 : index
    %0 = vector.load %arg0[%c0, %c0_0] : memref<4x16xf32, #tpu.memory_space<vmem>>, vector<4x16xf32>
    %c0_1 = arith.constant 0 : index
    %c0_2 = arith.constant 0 : index
    %1 = vector.load %arg1[%c0_1, %c0_2] : memref<16x32xf32, #tpu.memory_space<vmem>>, vector<16x32xf32>
    %c0_3 = arith.constant 0 : index
    %c0_4 = arith.constant 0 : index
    %2 = vector.load %arg2[%c0_3, %c0_4] : memref<1x32xf32, #tpu.memory_space<vmem>>, vector<1x32xf32>
    %cst = arith.constant dense<0.000000e+00> : vector<4x32xf32>
    %3 = tpu.matmul %0, %1, %cst {dimension_numbers = #tpu.dot_dimension_numbers<[1], [0], [0], [1], [0, 0, 1, 1], [], []>} : vector<4x16xf32>, vector<16x32xf32>, vector<4x32xf32> -> vector<4x32xf32>
    %4 = vector.broadcast %2 : vector<1x32xf32> to vector<4x32xf32>
    %5 = arith.addf %3, %4 : vector<4x32xf32>
    %cst_5 = arith.constant 0.000000e+00 : f32
    %6 = vector.broadcast %cst_5 : f32 to vector<4x32xf32>
    %7 = arith.maximumf %5, %6 : vector<4x32xf32>
    %c0_6 = arith.constant 0 : index
    %c0_7 = arith.constant 0 : index
    %8 = vector.load %arg3[%c0_6, %c0_7] : memref<32x32xf32, #tpu.memory_space<vmem>>, vector<32x32xf32>
    %c0_8 = arith.constant 0 : index
    %c0_9 = arith.constant 0 : index
    %9 = vector.load %arg4[%c0_8, %c0_9] : memref<1x32xf32, #tpu.memory_space<vmem>>, vector<1x32xf32>
    %cst_10 = arith.constant dense<0.000000e+00> : vector<4x32xf32>
    %10 = tpu.matmul %7, %8, %cst_10 {dimension_numbers = #tpu.dot_dimension_numbers<[1], [0], [0], [1], [0, 0, 1, 1], [], []>} : vector<4x32xf32>, vector<32x32xf32>, vector<4x32xf32> -> vector<4x32xf32>
    %11 = vector.broadcast %9 : vector<1x32xf32> to vector<4x32xf32>
    %12 = arith.addf %10, %11 : vector<4x32xf32>
    %cst_11 = arith.constant 0.000000e+00 : f32
    %13 = vector.broadcast %cst_11 : f32 to vector<4x32xf32>
    %14 = arith.maximumf %12, %13 : vector<4x32xf32>
    %c0_12 = arith.constant 0 : index
    %c0_13 = arith.constant 0 : index
    %15 = vector.load %arg5[%c0_12, %c0_13] : memref<1x32xf32, #tpu.memory_space<vmem>>, vector<1x32xf32>
    %c0_14 = arith.constant 0 : index
    %c0_15 = arith.constant 0 : index
    %16 = vector.load %arg6[%c0_14, %c0_15] : memref<1x1xf32, #tpu.memory_space<vmem>>, vector<1x1xf32>
    %17 = vector.broadcast %15 : vector<1x32xf32> to vector<4x32xf32>
    %18 = arith.mulf %14, %17 : vector<4x32xf32>
    %cst_16 = arith.constant dense<0.000000e+00> : vector<4xf32>
    %19 = vector.multi_reduction <add>, %18, %cst_16 [1] : vector<4x32xf32> to vector<4xf32>
    %20 = vector.shape_cast %19 : vector<4xf32> to vector<4x1xf32>
    %21 = vector.broadcast %16 : vector<1x1xf32> to vector<4x1xf32>
    %22 = arith.addf %20, %21 : vector<4x1xf32>
    %c0_17 = arith.constant 0 : index
    %c0_18 = arith.constant 0 : index
    %23 = vector.load %arg7[%c0_17, %c0_18] : memref<4x1xf32, #tpu.memory_space<vmem>>, vector<4x1xf32>
    tpu.vector_store %arg7[%c0_17, %c0_18], %22 {strides = array<i32>} : memref<4x1xf32, #tpu.memory_space<vmem>>, vector<4x1xf32>,
    return
  }
}

</mosaic_0001>

<bundles_post_ra>
// kernel: tpu_custom_call.1
= control target key start
LH: loop header
LB: loop body
LE: loop exit
PB: predicated region body
PF: predicated region fallthrough
CT: control target
= control target key end

     0   :  { %s490_s0 = inlined_call_operand.hbm [shape: f32[4,16], index: 0, kind: input, shape index: {}]   ;;  %s491_s1 = inlined_call_operand.hbm [shape: f32[16,32], index: 1, kind: input, shape index: {}]   ;;  %s492_s2 = inlined_call_operand.vmem [shape: f32[1,32], index: 2, kind: input, shape index: {}]   ;;  %s493_s3 = inlined_call_operand.hbm [shape: f32[32,32], index: 3, kind: input, shape index: {}]   ;;  %s494_s4 = inlined_call_operand.vmem [shape: f32[1,32], index: 4, kind: input, shape index: {}]   ;;  %s495_s5 = inlined_call_operand.vmem [shape: f32[1,32], index: 5, kind: input, shape index: {}]   ;;  %s496_s6 = inlined_call_operand.<no memory space> [shape: f32[1,1], index: 6, kind: input, shape index: {}]   ;;  %s497_s7 = inlined_call_operand.vmem [shape: f32[4,1], index: 7, kind: output, shape index: {}]  }
   0x1   :  { %v12_v0 = vstv %s496_s6 }
   0x2   :  { %13 = vst [vmem:[#allocation2] sm:$0x1] %v12_v0 }
   0x3   :  { %14 = vsyncpa [#allocation4], 0 }
   0x4   :  { %15 = vsyncpa [#allocation6], 0  ;;  %s385_s26 = smov [#allocation5]   ;;  %s315_s30 = scalar_lea.hbm %s491_s1, 256 }
   0x5   :  { %s31_s27 = sshll.u32 %s385_s26, 4  ;;  %p316_p0 = scmp.ne.s32.totalorder %s491_s1, %s315_s30  ;;  %s32_s27 = int_to_ptr.vmem [resolvable:$true] %s31_s27 }
   0x6   :  { %p319_p1 = scmp.lt.u32.totalorder %s315_s30, %s491_s1 }
   0x8   :  { %p321_p2 = pnand %p319_p1, %p316_p0 }
   0xa   :  { %324 = shalt.err (!%p321_p2)
}
   0xb   :  { %s325_s6 = scalar_lea.vmem %s32_s27, 256  ;;  %p330_p4 = scmp.lt.s32.totalorder %s32_s27, %s32_s27 }
   0xc   :  { %p326_p3 = scmp.ne.s32.totalorder %s32_s27, %s325_s6  ;;  %p331_p5 = scmp.lt.s32.totalorder %s325_s6, %s325_s6 }
   0xe   :  { %p332_p6 = por %p331_p5, %p330_p4 }
  0x10   :  { %p333_p7 = pnand %p332_p6, %p326_p3 }
  0x12   :  { %336 = shalt.err (!%p333_p7)
}
  0x13   :  { %s386_s12 = smov 128   ;;  %s387_s13 = smov 8  }
  0x14   :  { %37 = dma.hbm_to_vmem [thread:$0]  %s491_s1, 256, %s32_s27, [#allocation6], %s386_s12, %s386_s12, %s387_s13  }
  0x15   :  { %s388_s16 = smov [#allocation3]   ;;  %s389_s18 = smov [#allocation7]  }
  0x16   :  { %s22_s17 = sshll.u32 %s388_s16, 4  ;;  %s45_s19 = sshll.u32 %s389_s18, 4  ;;  %s23_s17 = int_to_ptr.vmem [resolvable:$true] %s22_s17  ;;  %s46_s19 = int_to_ptr.vmem [resolvable:$true] %s45_s19 }
  0x17   :  { %s337_s22 = scalar_lea.hbm %s490_s0, 64 }
  0x18   :  { %p338_p8 = scmp.ne.s32.totalorder %s490_s0, %s337_s22  ;;  %p341_p9 = scmp.lt.u32.totalorder %s337_s22, %s490_s0 }
  0x1a   :  { %p343_p10 = pnand %p341_p9, %p338_p8 }
  0x1c   :  { %346 = shalt.err (!%p343_p10)
}
  0x1d   :  { %s347_s1 = scalar_lea.vmem %s23_s17, 64  ;;  %p352_p12 = scmp.lt.s32.totalorder %s23_s17, %s23_s17 }
  0x1e   :  { %p348_p11 = scmp.ne.s32.totalorder %s23_s17, %s347_s1  ;;  %p353_p13 = scmp.lt.s32.totalorder %s347_s1, %s347_s1 }
  0x20   :  { %p354_p0 = por %p353_p13, %p352_p12 }
  0x22   :  { %p355_p1 = pnand %p354_p0, %p348_p11 }
  0x24   :  { %358 = shalt.err (!%p355_p1)
}
  0x25   :  { %25 = dma.hbm_to_vmem [thread:$0]  %s490_s0, 64, %s23_s17, [#allocation4]  }
  0x26   :  { %s359_s8 = scalar_lea.hbm %s493_s3, 512 }
  0x27   :  { %p360_p2 = scmp.ne.s32.totalorder %s493_s3, %s359_s8  ;;  %p363_p3 = scmp.lt.u32.totalorder %s359_s8, %s493_s3 }
  0x29   :  { %p365_p4 = pnand %p363_p3, %p360_p2 }
  0x2b   :  { %368 = shalt.err (!%p365_p4)
}
  0x2c   :  { %s369_s14 = scalar_lea.vmem %s46_s19, 512  ;;  %p374_p6 = scmp.lt.s32.totalorder %s46_s19, %s46_s19 }
  0x2d   :  { %p370_p5 = scmp.ne.s32.totalorder %s46_s19, %s369_s14  ;;  %p375_p7 = scmp.lt.s32.totalorder %s369_s14, %s369_s14 }
  0x2f   :  { %p376_p8 = por %p375_p7, %p374_p6 }
  0x31   :  { %p377_p9 = pnand %p376_p8, %p370_p5 }
  0x33   :  { %380 = shalt.err (!%p377_p9)
}
  0x34   :  { %51 = dma.hbm_to_vmem [thread:$0]  %s493_s3, 512, %s46_s19, [#allocation6], %s386_s12, %s386_s12, %s387_s13  }
  0x35   :  { %381 = dma.done.wait [#allocation4], 64  }
  0x36   :  { %382 = vsyncadd [#allocation4], 4294967232 }
  0x37   :  { %383 = dma.done.wait [#allocation6], 768  }
  0x38   :  { %384 = vsyncadd [#allocation6], 4294966528  ;;  %v390_v1 = vmov 0.0|0.0   ;;  %vm391_vm0 = vmmov 0   ;;  %v392_v2 = vmov 0.0   ;;  %v68_v3 = vld [vmem:[#allocation5] sm:$0xff] }
  0x39   :  { %298 = vmatprep.subr.bf16.mxu0 %v390_v1  ;;  %284 = vmatprep.mubr.msk.f32.mxu0 %vm391_vm0, %v392_v2  ;;  %v69_v4 = vld [vmem:[#allocation5 + $0x8] sm:$0xff]  ;;  %v152_v6 = vld [vmem:[#allocation7] sm:$0xff]  ;;  %v153_v7 = vld [vmem:[#allocation7 + $0x8] sm:$0xff]  ;;  %vm77_vm1 = vcmask 130048   ;;  %vm163_vm2 = vcmask 261120   ;;  %vm247_vm3 = vcmask 257024  }
  0x3a   :  { %301 = vmatprep.subr.bf16.mxu1 %v390_v1  ;;  %295 = vmatprep.mubr.msk.f32.mxu1 %vm391_vm0, %v392_v2  ;;  %v299_v5 = vpack.c.bf16 %v69_v4, %v68_v3  ;;  %v302_v8 = vpack.c.bf16 %v153_v7, %v152_v6  ;;  %v67_v9 = vld [vmem:[#allocation3] sm:$0xf]  ;;  %v154_v10 = vld [vmem:[#allocation7 + $0x10] sm:$0xff]  ;;  %v155_v11 = vld [vmem:[#allocation7 + $0x18] sm:$0xff]  ;;  %vm258_vm4 = vcmask 3072  }
  0x3b   :  { %v305_v12 = vpack.c.bf16 %v155_v11, %v154_v10  ;;  %v266_v13 = vld [vmem:[%s492_s2] ss:$0 sm:$0xff] }
  0x3c   :  { %300 = vmatpush3.bf16.msra.mxu0 %v299_v5  ;;  %303 = vmatpush3.bf16.msra.mxu1 %v302_v8  ;;  %v268_v18 = vld [vmem:[%s494_s4] ss:$0 sm:$0xff] }
  0x3d   :  { %304 = vmatprep.subr.bf16.mxu1 %v390_v1  ;;  %v270_v22 = vld [vmem:[%s495_s5] ss:$0 sm:$0xff] }
  0x3e   :  { %v271_v26 = vld [vmem:[#allocation2] ss:$0 sm:$0xff] }
  0x3f   :  { %285 = vmatmul.mubr.msk.f32.vlgmr.msra.gmra.mrb[0].mxu0 %vm77_vm1, %v67_v9 }
  0x40   :  { %306 = vmatpush3.bf16.msra.mxu1 %v305_v12 }
 0x112   :  { %v147_v14 = vpop.f32.mrb[0].mxu0 }
 0x113   :  { %v148_v15 = vadd.f32 %v266_v13, %v147_v14  ;;  %v286_v16 = vpop.f32.mrb[1].mxu0 }
 0x115   :  { %v151_v17 = vmax.f32 %v148_v15, 0.0 }
 0x117   :  { %296 = vmatmul.mubr.msk.f32.vlgmr.msra.gmra.mrb[0].mxu1 %vm163_vm2, %v151_v17 }
 0x1ea   :  { %v233_v19 = vpop.f32.mrb[0].mxu1 }
 0x1eb   :  { %v234_v20 = vadd.f32 %v268_v18, %v233_v19  ;;  %v297_v21 = vpop.f32.mrb[1].mxu1 }
 0x1ed   :  { %v237_v23 = vmax.f32 %v234_v20, 0.0 }
 0x1ef   :  { %v246_v24 = vmul.f32 %v270_v22, %v237_v23 }
 0x1f1   :  { %v248_v25 = vsel %vm247_vm3, %v246_v24, 0.0 }
 0x1f2   :  { %249 = vadd.xlane.f32.xlu0 %v248_v25 }
 0x27f   :  { %v250_v27 = vpop.xlane.xlu0 %249 }
 0x280   :  { %v257_v28 = vadd.f32 %v271_v26, %v250_v27 }
 0x282   :  { %259 = vst.msk [vmem:[%s497_s7] sm:$0xf] %vm258_vm4, %v257_v28 }
 0x283   :  { %264 = vsyncpa [#allocation4], 1 }
 0x284   :  { %265 = vsyncpa [#allocation6], 1 }

</bundles_post_ra>
